<compile_context>
chip_gen: v7x
topology: tpu7x:2x2x1
jax: 0.10.0
libtpu: 0.0.40
codegen_flags: <defaults>
</compile_context>

<pallas_src>
import numpy as np
import jax
import jax.numpy as jnp
from jax.experimental import pallas as pl
from jax.experimental.pallas import tpu as pltpu


SAMPLE_OPTIONS = (-1, 0.1, 0.3, 0.5, 0.7, 0.9, 0)


# --------------------------------------------------------------------------
# Kernel 1: boxes-only kernel (cheap; called every retry attempt).
# --------------------------------------------------------------------------
def _make_boxes_kernel(N):
    def kernel(sc_ref, boxes_t_ref, newboxes_t_ref, mask_ref, count_ref):
        # scalars (SMEM): [min_x, min_y, max_x, max_y, crop_h, crop_w, 0, 0]
        fx0 = sc_ref[0].astype(jnp.float32)
        fy0 = sc_ref[1].astype(jnp.float32)
        fx1 = sc_ref[2].astype(jnp.float32)
        fy1 = sc_ref[3].astype(jnp.float32)

        boxes_t = boxes_t_ref[...]                 # (4, N): box index on lanes
        bx = boxes_t[0:1, :]                       # (1, N)
        by = boxes_t[1:2, :]                       # (1, N)
        in_patch = (bx >= fx0) & (bx <= fx1) & (by >= fy0) & (by <= fy1)
        in_patch_i = in_patch.astype(jnp.int32)
        mask_ref[...] = in_patch_i                 # lane-dense (1, N)
        count_ref[...] = jnp.sum(in_patch_i, keepdims=True)   # (1, 1)

        # TODO(synk): update_coord_new_boundary is not defined in the reference
        # source; we implement the canonical shift-to-patch-origin
        # (x - min_x, y - min_y), leaving rows 2/3 (w, h) unchanged.
        rowid = jax.lax.broadcasted_iota(jnp.int32, (4, N), 0)
        shift = jnp.where(rowid == 0, fx0, jnp.where(rowid == 1, fy0, 0.0))
        newboxes_t_ref[...] = boxes_t - shift

    return kernel


def build_boxes_call(N):
    kernel = _make_boxes_kernel(N)
    return pl.pallas_call(
        kernel,
        out_shape=(
            jax.ShapeDtypeStruct((4, N), jnp.float32),   # shifted boxes (transposed)
            jax.ShapeDtypeStruct((1, N), jnp.int32),     # in-patch mask (lane-dense)
            jax.ShapeDtypeStruct((1, 1), jnp.int32),     # count of boxes in patch
        ),
        in_specs=[
            pl.BlockSpec(memory_space=pltpu.MemorySpace.SMEM),   # scalars
            pl.BlockSpec(memory_space=pltpu.MemorySpace.VMEM),   # boxes^T
        ],
        out_specs=(
            pl.BlockSpec(memory_space=pltpu.MemorySpace.VMEM),
            pl.BlockSpec(memory_space=pltpu.MemorySpace.VMEM),
            pl.BlockSpec(memory_space=pltpu.MemorySpace.VMEM),
        ),
    )


# --------------------------------------------------------------------------
# Kernel 2: image-crop kernel (run exactly once per accepted patch).
# Grid over channels; each step handles one (H, W) channel.
# --------------------------------------------------------------------------
def _make_crop_kernel(H, W):
    def kernel(sc_ref, img_ref, crop_ref, buf_ref):
        min_x = sc_ref[0]
        min_y = sc_ref[1]
        crop_h = sc_ref[4]
        crop_w = sc_ref[5]

        img = img_ref[0]                           # (H, W) f32

        # ---- row crop: manual circular roll by min_y ----
        # Duplicate the channel into a (2H, W) scratch and read H rows starting
        # at min_y with a dynamic-start sublane slice: rows[i] = img[(min_y+i)%H].
        # Zero MXU / VPU cost; replaces the (H, H) selection matmul.
        buf_ref[0:H, :] = img
        buf_ref[H:2 * H, :] = img
        rows = buf_ref[pl.ds(min_y, H), :]         # (H, W)

        # ---- column crop: single lane-side selection matmul on the MXU ----
        # (dynamic lane shifts are not reliably lowerable for W not a multiple
        #  of 128, so the lane-side selection stays as a matmul; it now runs
        #  once per accepted sample instead of up to 50x.)
        lx = jax.lax.broadcasted_iota(jnp.int32, (W, W), 0)   # source col
        jx = jax.lax.broadcasted_iota(jnp.int32, (W, W), 1)   # output col
        s_xt = ((lx == jx + min_x) & (jx < crop_w)).astype(jnp.float32)  # (W, W)
        cols = jnp.dot(rows, s_xt, preferred_element_type=jnp.float32)   # (H, W)

        # zero the rows past the (truncated) crop height
        iy = jax.lax.broadcasted_iota(jnp.int32, (H, W), 0)
        crop_ref[0] = jnp.where(iy < crop_h, cols, 0.0)

    return kernel


def build_crop_call(C, H, W):
    kernel = _make_crop_kernel(H, W)
    return pl.pallas_call(
        kernel,
        out_shape=jax.ShapeDtypeStruct((C, H, W), jnp.float32),
        grid_spec=pltpu.PrefetchScalarGridSpec(
            num_scalar_prefetch=1,                 # patch scalars live in SMEM
            grid=(C,),
            in_specs=[pl.BlockSpec((1, H, W), lambda c, sc: (c, 0, 0))],
            out_specs=pl.BlockSpec((1, H, W), lambda c, sc: (c, 0, 0)),
            scratch_shapes=[pltpu.VMEM((2 * H, W), jnp.float32)],
        ),
        compiler_params=pltpu.CompilerParams(
            dimension_semantics=("parallel",),     # shard channels across TCs (v7x)
            vmem_limit_bytes=64 * 1024 * 1024,     # headroom for large images (v5e)
        ),
    )
    # TODO(synk): for very large images, additionally tile H with a
    # scalar-prefetched index_map so only rows in [min_y, min_y+crop_h) are
    # DMA'd from HBM.


# --------------------------------------------------------------------------
# Host wrapper mirroring RandomPatchWithIoUBound.forward (numpy rng sampling,
# hot-path compute via the Pallas kernels).
# --------------------------------------------------------------------------
def random_patch_with_iou_bound(img, boxes, labels, rng):
    C, H, W = img.shape
    num_boxes = boxes.shape[0]
    boxes_call = build_boxes_call(num_boxes)
    crop_call = build_crop_call(C, H, W)

    boxes_t = jnp.asarray(boxes).T                       # (4, N), built once
    labels_np = np.asarray(jax.device_get(labels))

    while True:
        min_obj_remain = rng.choice(SAMPLE_OPTIONS)
        if min_obj_remain < 0:
            return img, boxes, labels
        min_num_boxes = int(min_obj_remain * num_boxes)
        for _ in range(50):
            scale = rng.uniform(0.1, 1)
            ar = rng.uniform(0.5, 2)
            patch_h = min(np.floor(np.sqrt(scale / ar) * H), H)
            patch_w = min(np.floor(np.sqrt(scale * ar) * W), W)
            min_x = int(rng.integers(0, int(W - patch_w + 1)))
            min_y = int(rng.integers(0, int(H - patch_h + 1)))
            max_x = int(min_x + patch_h)   # reproduces the reference's h/w swap
            max_y = int(min_y + patch_w)
            crop_h = max(0, min(max_y, H) - min_y)   # python-slice truncation
            crop_w = max(0, min(max_x, W) - min_x)
            scalars = jnp.array(
                [min_x, min_y, max_x, max_y, crop_h, crop_w, 0, 0], jnp.int32)

            # cheap boxes-only kernel; ONE host round trip per attempt
            newboxes_t, mask, count = boxes_call(scalars, boxes_t)
            count_h, mask_h, newboxes_h = jax.device_get((count, mask, newboxes_t))

            if int(count_h[0, 0]) >= min_num_boxes:
                keep = mask_h[0] > 0
                in_boxes = jnp.asarray(newboxes_h.T[keep])
                in_labels = jnp.asarray(labels_np[keep])
                # expensive crop kernel runs exactly once, after acceptance
                crop = crop_call(scalars, img)
                new_img = jnp.asarray(
                    np.asarray(jax.device_get(crop))[:, :crop_h, :crop_w])
                return new_img, in_boxes, in_labels


if __name__ == "__main__":
    C, H, W, N = 3, 16, 16, 8
    key = jax.random.PRNGKey(0)
    kimg, kxy, kwh, klb = jax.random.split(key, 4)
    img = jax.random.uniform(kimg, (C, H, W), jnp.float32)
    xy = jax.random.uniform(kxy, (N, 2), jnp.float32, 0.0, float(W))
    wh = jax.random.uniform(kwh, (N, 2), jnp.float32, 1.0, 5.0)
    boxes = jnp.concatenate([xy, wh], axis=1)            # (N, 4): [x, y, w, h]
    labels = jax.random.randint(klb, (N,), 0, 10, dtype=jnp.int32)

    # 1) Exercise both kernels directly on a fixed patch, verify vs numpy.
    boxes_call = build_boxes_call(N)
    crop_call = build_crop_call(C, H, W)

    min_x, min_y, max_x, max_y = 3, 2, 12, 11
    crop_h = min(max_y, H) - min_y
    crop_w = min(max_x, W) - min_x
    scalars = jnp.array([min_x, min_y, max_x, max_y, crop_h, crop_w, 0, 0],
                        jnp.int32)

    new_boxes_t, mask, count = jax.block_until_ready(
        boxes_call(scalars, boxes.T))
    crop = jax.block_until_ready(crop_call(scalars, img))

    np_boxes = np.asarray(boxes)
    np_img = np.asarray(img)
    ref_mask = ((np_boxes[:, 0] >= min_x) & (np_boxes[:, 0] <= max_x)
                & (np_boxes[:, 1] >= min_y) & (np_boxes[:, 1] <= max_y))
    assert np.array_equal(np.asarray(mask)[0] > 0, ref_mask)
    assert int(np.asarray(count)[0, 0]) == int(np.count_nonzero(ref_mask))
    np.testing.assert_allclose(
        np.asarray(crop)[:, :crop_h, :crop_w],
        np_img[:, min_y:max_y, min_x:max_x], rtol=1e-6, atol=1e-6)
    ref_new = np_boxes.copy()
    ref_new[:, 0] -= min_x
    ref_new[:, 1] -= min_y
    np.testing.assert_allclose(np.asarray(new_boxes_t).T, ref_new,
                               rtol=1e-6, atol=1e-6)

    # 2) Full transform (random sampling mirrors the torch module's np.random).
    rng = np.random.default_rng(0)
    out_img, out_boxes, out_labels = random_patch_with_iou_bound(
        img, boxes, labels, rng)
    jax.block_until_ready((out_img, out_boxes, out_labels))
    print("KERNEL_OK")
</pallas_src>

<mosaic_0001>
module attributes {stable_mosaic.version = 11 : i64} {
  func.func @kernel(%arg0: memref<8xi32, #tpu.memory_space<smem>>, %arg1: memref<4x8xf32, #tpu.memory_space<vmem>>, %arg2: memref<4x8xf32, #tpu.memory_space<vmem>>, %arg3: memref<1x8xi32, #tpu.memory_space<vmem>>, %arg4: memref<1x1xi32, #tpu.memory_space<vmem>>) attributes {dimension_semantics = [], scalar_prefetch = 0 : i64, scratch_operands = 0 : i64, tpu.core_type = #tpu.core_type<tc>} {
    %c0 = arith.constant 0 : index
    %0 = memref.load %arg0[%c0] : memref<8xi32, #tpu.memory_space<smem>>
    %1 = arith.sitofp %0 : i32 to f32
    %c1 = arith.constant 1 : index
    %2 = memref.load %arg0[%c1] : memref<8xi32, #tpu.memory_space<smem>>
    %3 = arith.sitofp %2 : i32 to f32
    %c2 = arith.constant 2 : index
    %4 = memref.load %arg0[%c2] : memref<8xi32, #tpu.memory_space<smem>>
    %5 = arith.sitofp %4 : i32 to f32
    %c3 = arith.constant 3 : index
    %6 = memref.load %arg0[%c3] : memref<8xi32, #tpu.memory_space<smem>>
    %7 = arith.sitofp %6 : i32 to f32
    %c0_0 = arith.constant 0 : index
    %c0_1 = arith.constant 0 : index
    %8 = vector.load %arg1[%c0_0, %c0_1] : memref<4x8xf32, #tpu.memory_space<vmem>>, vector<4x8xf32>
    %9 = vector.extract_strided_slice %8 {offsets = [0, 0], sizes = [1, 8], strides = [1, 1]} : vector<4x8xf32> to vector<1x8xf32>
    %10 = vector.extract_strided_slice %8 {offsets = [1, 0], sizes = [1, 8], strides = [1, 1]} : vector<4x8xf32> to vector<1x8xf32>
    %11 = vector.broadcast %1 : f32 to vector<1x8xf32>
    %12 = arith.cmpf oge, %9, %11 : vector<1x8xf32>
    %13 = vector.broadcast %5 : f32 to vector<1x8xf32>
    %14 = arith.cmpf ole, %9, %13 : vector<1x8xf32>
    %15 = arith.andi %12, %14 : vector<1x8xi1>
    %16 = vector.broadcast %3 : f32 to vector<1x8xf32>
    %17 = arith.cmpf oge, %10, %16 : vector<1x8xf32>
    %18 = arith.andi %15, %17 : vector<1x8xi1>
    %19 = vector.broadcast %7 : f32 to vector<1x8xf32>
    %20 = arith.cmpf ole, %10, %19 : vector<1x8xf32>
    %21 = arith.andi %18, %20 : vector<1x8xi1>
    %22 = arith.extui %21 : vector<1x8xi1> to vector<1x8xi32>
    %c0_2 = arith.constant 0 : index
    %c0_3 = arith.constant 0 : index
    %23 = vector.load %arg3[%c0_2, %c0_3] : memref<1x8xi32, #tpu.memory_space<vmem>>, vector<1x8xi32>
    tpu.vector_store %arg3[%c0_2, %c0_3], %22 {strides = array<i32>} : memref<1x8xi32, #tpu.memory_space<vmem>>, vector<1x8xi32>,
    %24 = vector.shape_cast %22 : vector<1x8xi32> to vector<1x1x8xi32>
    %cst = arith.constant dense<0> : vector<1xi32>
    %25 = vector.multi_reduction <add>, %24, %cst [1, 2] : vector<1x1x8xi32> to vector<1xi32>
    %26 = vector.shape_cast %25 : vector<1xi32> to vector<1x1x1xi32>
    %27 = vector.extract %26[0, 0, 0] : i32 from vector<1x1x1xi32>
    %28 = vector.broadcast %27 : i32 to vector<1x1xi32>
    %c0_4 = arith.constant 0 : index
    %c0_5 = arith.constant 0 : index
    %29 = vector.load %arg4[%c0_4, %c0_5] : memref<1x1xi32, #tpu.memory_space<vmem>>, vector<1x1xi32>
    tpu.vector_store %arg4[%c0_4, %c0_5], %28 {strides = array<i32>} : memref<1x1xi32, #tpu.memory_space<vmem>>, vector<1x1xi32>,
    %30 = tpu.iota {dimensions = array<i32: 0>} : vector<4x8xi32>
    %c0_i32 = arith.constant 0 : i32
    %31 = vector.broadcast %c0_i32 : i32 to vector<4x8xi32>
    %32 = arith.cmpi eq, %30, %31 : vector<4x8xi32>
    %c1_i32 = arith.constant 1 : i32
    %33 = vector.broadcast %c1_i32 : i32 to vector<4x8xi32>
    %34 = arith.cmpi eq, %30, %33 : vector<4x8xi32>
    %cst_6 = arith.constant 0.000000e+00 : f32
    %35 = vector.broadcast %3 : f32 to vector<4x8xf32>
    %36 = vector.broadcast %cst_6 : f32 to vector<4x8xf32>
    %37 = arith.select %34, %35, %36 : vector<4x8xi1>, vector<4x8xf32>
    %38 = vector.broadcast %1 : f32 to vector<4x8xf32>
    %39 = arith.select %32, %38, %37 : vector<4x8xi1>, vector<4x8xf32>
    %40 = arith.subf %8, %39 : vector<4x8xf32>
    %c0_7 = arith.constant 0 : index
    %c0_8 = arith.constant 0 : index
    %41 = vector.load %arg2[%c0_7, %c0_8] : memref<4x8xf32, #tpu.memory_space<vmem>>, vector<4x8xf32>
    tpu.vector_store %arg2[%c0_7, %c0_8], %40 {strides = array<i32>} : memref<4x8xf32, #tpu.memory_space<vmem>>, vector<4x8xf32>,
    return
  }
}

</mosaic_0001>

<bundles_post_ra>
// kernel: tpu_custom_call.1
= control target key start
LH: loop header
LB: loop body
LE: loop exit
PB: predicated region body
PF: predicated region fallthrough
CT: control target
= control target key end

     0   :  { %10 = vsyncpa [#allocation5], 0  ;;  %s352_s0 = inlined_call_operand.hbm [shape: s32[8], index: 0, kind: input, shape index: {}]   ;;  %s353_s1 = inlined_call_operand.hbm [shape: f32[4,8], index: 1, kind: input, shape index: {}]   ;;  %s354_s2 = inlined_call_operand.hbm [shape: f32[4,8], index: 2, kind: output, shape index: {0}]   ;;  %s355_s3 = inlined_call_operand.hbm [shape: s32[1,8], index: 3, kind: output, shape index: {1}]   ;;  %s356_s4 = inlined_call_operand.hbm [shape: s32[1,1], index: 4, kind: output, shape index: {2}]  }
   0x1   :  { %11 = vsyncpa [#allocation3], 0 }
   0x2   :  { %12 = vsyncpa [#allocation4], 0 }
   0x3   :  { %13 = vsyncpa [#allocation9], 0  ;;  %s154_s17 = scalar_lea.hbm %s352_s0, 16 }
   0x4   :  { %p155_p0 = scmp.ne.s32.totalorder %s352_s0, %s154_s17  ;;  %p158_p1 = scmp.lt.u32.totalorder %s154_s17, %s352_s0 }
   0x6   :  { %p160_p2 = pnand %p158_p1, %p155_p0 }
   0x8   :  { %163 = shalt.err (!%p160_p2)
}
   0x9   :  { %s260_s22 = smov [#allocation2]   ;;  %s261_s25 = smov [#allocation6]  }
   0xa   :  { %21 = dma.hbm_to_smem %s352_s0, 16, %s260_s22, [#allocation5]  }
   0xb   :  { %s28_s26 = sshll.u32 %s261_s25, 4  ;;  %s164_s29 = scalar_lea.hbm %s353_s1, 64  ;;  %s29_s26 = int_to_ptr.vmem [resolvable:$true] %s28_s26 }
   0xc   :  { %p165_p3 = scmp.ne.s32.totalorder %s353_s1, %s164_s29  ;;  %p168_p4 = scmp.lt.u32.totalorder %s164_s29, %s353_s1 }
   0xe   :  { %p170_p5 = pnand %p168_p4, %p165_p3 }
  0x10   :  { %173 = shalt.err (!%p170_p5)
}
  0x11   :  { %s174_s8 = scalar_lea.vmem %s29_s26, 64  ;;  %p179_p7 = scmp.lt.s32.totalorder %s29_s26, %s29_s26 }
  0x12   :  { %p175_p6 = scmp.ne.s32.totalorder %s29_s26, %s174_s8  ;;  %p180_p8 = scmp.lt.s32.totalorder %s174_s8, %s174_s8 }
  0x14   :  { %p181_p9 = por %p180_p8, %p179_p7 }
  0x16   :  { %p182_p10 = pnand %p181_p9, %p175_p6 }
  0x18   :  { %185 = shalt.err (!%p182_p10)
}
  0x19   :  { %31 = dma.hbm_to_vmem [thread:$0]  %s353_s1, 64, %s29_s26, [#allocation3]  }
  0x1a   :  { %252 = dma.done.wait [#allocation5], 16  }
  0x1b   :  { %253 = vsyncadd [#allocation5], 4294967280 }
  0x1c   :  { %254 = dma.done.wait [#allocation3], 64  }
  0x1d   :  { %255 = vsyncadd [#allocation3], 4294967232 }
  0x1e   :  { %38 = sfence }
  0x1f   :  { %s39_s10 = sld [smem:[#allocation2]]  ;;  %s143_s11 = sld [smem:[#allocation2 + $0x1]]  ;;  %v47_v0 = vld [vmem:[#allocation6] sm:$0xf]  ;;  %v262_v5 = vmov 0   ;;  %vm66_vm8 = vcmask 57344   ;;  %v91_v16 = vlaneseq }
  0x20   :  { %s144_s12 = sld [smem:[#allocation2 + $0x2]]  ;;  %s145_s13 = sld [smem:[#allocation2 + $0x3]]  ;;  %vm98_vm12 = vcmask 60416  }
  0x21   :  { %v92_v17 = vshrl.u32 %v91_v16, 7  ;;  %s263_s1 = smov [#allocation8]   ;;  %s264_s19 = smov [#allocation7]  }
  0x22   :  { %s116_s18 = sshll.u32 %s263_s1, 4  ;;  %s106_s20 = sshll.u32 %s264_s19, 4  ;;  %s117_s18 = int_to_ptr.vmem [resolvable:$true] %s116_s18  ;;  %s107_s20 = int_to_ptr.vmem [resolvable:$true] %s106_s20 }
  0x23   :  { %vm94_vm10 = vcmp.eq.s32.totalorder %v92_v17, 1  ;;  %vm93_vm11 = vcmp.eq.s32.totalorder %v92_v17, 0  ;;  %s186_s21 = scalar_lea.vmem %s117_s18, 16  ;;  %s190_s22 = scalar_lea.vmem %s117_s18, 32 }
  0x24   :  { %p187_p11 = scmp.ne.s32.totalorder %s117_s18, %s186_s21  ;;  %p191_p12 = scmp.lt.s32.totalorder %s117_s18, %s117_s18 }
  0x25   :  { %s40_s14 = scvt.s32.f32 %s39_s10  ;;  %s42_s15 = scvt.s32.f32 %s143_s11 }
  0x26   :  { %s44_s16 = scvt.s32.f32 %s144_s12  ;;  %s46_s17 = scvt.s32.f32 %s145_s13 }
  0x27   :  { %v48_v1 = vstv %s40_s14  ;;  %v53_v2 = vstv %s42_s15  ;;  %p192_p13 = scmp.lt.s32.totalorder %s190_s22, %s186_s21 }
  0x28   :  { %vm49_vm0 = vcmp.ge.f32.partialorder %v47_v0, %v48_v1  ;;  %v50_v3 = vstv %s44_s16  ;;  %vm54_vm1 = vcmp.ge.f32.partialorder %v47_v0, %v53_v2  ;;  %v59_v4 = vstv %s46_s17 }
  0x29   :  { %vm51_vm2 = vcmp.le.f32.partialorder %v47_v0, %v50_v3  ;;  %v55_v6 = vsel %vm54_vm1, 1, %v262_v5  ;;  %vm60_vm3 = vcmp.le.f32.partialorder %v47_v0, %v59_v4  ;;  %v95_v18 = vsel %vm94_vm10, %v53_v2, 0.0  ;;  %p193_p0 = por %p192_p13, %p191_p12 }
  0x2a   :  { %vm52_vm4 = vmand %vm49_vm0, %vm51_vm2  ;;  %v56_v7 = vrot.slane %v55_v6, 1  ;;  %v61_v8 = vsel %vm60_vm3, 1, %v262_v5  ;;  %v96_v19 = vsel %vm93_vm11, %v48_v1, %v95_v18 }
  0x2b   :  { %v62_v9 = vrot.slane %v61_v8, 1  ;;  %v97_v20 = vsub.f32 %v47_v0, %v96_v19  ;;  %p194_p1 = pnand %p193_p0, %p187_p11 }
  0x2c   :  { %vm57_vm5 = vcmp.ne.s32.totalorder %v56_v7, 0 }
  0x2d   :  { %vm58_vm6 = vmand %vm52_vm4, %vm57_vm5  ;;  %vm63_vm7 = vcmp.ne.s32.totalorder %v62_v9, 0 }
  0x2e   :  { %vm64_vm9 = vmand %vm58_vm6, %vm63_vm7 }
  0x2f   :  { %v65_v10 = vsel %vm64_vm9, 1, %v262_v5 }
  0x30   :  { %v68_v11 = vsel %vm66_vm8, %v65_v10, 0  ;;  %67 = vst.msk [vmem:[#allocation8] sm:$0x1] %vm66_vm8, %v65_v10 }
  0x31   :  { %v70_v12 = vshrl.u32 %v68_v11, 16  ;;  %v69_v13 = vand.u32 65535, %v68_v11 }
  0x33   :  { %v72_v14 = vcvt.s32.f32 %v70_v12  ;;  %v71_v15 = vcvt.s32.f32 %v69_v13 }
  0x35   :  { %75 = vadd.xlane.f32.xlu0 %v72_v14 }
  0x39   :  { %73 = vadd.xlane.f32.xlu0 %v71_v15 }
  0x3a   :  { %197 = shalt.err (!%p194_p1)
}
  0x3b   :  { %s198_s25 = scalar_lea.hbm %s355_s3, 16 }
  0x3c   :  { %p199_p2 = scmp.ne.s32.totalorder %s355_s3, %s198_s25  ;;  %p202_p3 = scmp.lt.u32.totalorder %s198_s25, %s355_s3 }
  0x3e   :  { %p204_p4 = pnand %p202_p3, %p199_p2 }
  0x40   :  { %207 = shalt.err (!%p204_p4)
}
  0x41   :  { %119 = dma.vmem_to_hbm [thread:$0]  %s117_s18, 16, %s355_s3, [#allocation9]   ;;  %99 = vst.msk [vmem:[#allocation7] sm:$0xf] %vm98_vm12, %v97_v20 }
  0x42   :  { %s208_s6 = scalar_lea.vmem %s107_s20, 64  ;;  %p213_p6 = scmp.lt.s32.totalorder %s107_s20, %s107_s20 }
  0x43   :  { %p209_p5 = scmp.ne.s32.totalorder %s107_s20, %s208_s6  ;;  %p214_p7 = scmp.lt.s32.totalorder %s208_s6, %s208_s6 }
  0x45   :  { %p215_p8 = por %p214_p7, %p213_p6 }
  0x47   :  { %p216_p9 = pnand %p215_p8, %p209_p5 }
  0x49   :  { %219 = shalt.err (!%p216_p9)
}
  0x4a   :  { %s220_s0 = scalar_lea.hbm %s354_s2, 64 }
  0x4b   :  { %p221_p10 = scmp.ne.s32.totalorder %s354_s2, %s220_s0  ;;  %p224_p11 = scmp.lt.u32.totalorder %s220_s0, %s354_s2 }
  0x4d   :  { %p226_p12 = pnand %p224_p11, %p221_p10 }
  0x4f   :  { %229 = shalt.err (!%p226_p12)
}
  0x50   :  { %109 = dma.vmem_to_hbm [thread:$0]  %s107_s20, 64, %s354_s2, [#allocation4]   ;;  %vm89_vm13 = vcmask 0  }
  0x51   :  { %s265_s14 = smov [#allocation10]  }
  0x52   :  { %s126_s15 = sshll.u32 %s265_s14, 4  ;;  %s127_s15 = int_to_ptr.vmem [resolvable:$true] %s126_s15 }
  0x53   :  { %s230_s2 = scalar_lea.vmem %s127_s15, 16  ;;  %s234_s17 = scalar_lea.vmem %s127_s15, 32 }
  0x54   :  { %p231_p13 = scmp.ne.s32.totalorder %s127_s15, %s230_s2  ;;  %p235_p0 = scmp.lt.s32.totalorder %s127_s15, %s127_s15 }
  0x55   :  { %p236_p1 = scmp.lt.s32.totalorder %s234_s17, %s230_s2 }
  0x57   :  { %p237_p2 = por %p236_p1, %p235_p0 }
  0x59   :  { %p238_p3 = pnand %p237_p2, %p231_p13 }
  0xc2   :  { %v76_v21 = vpop.xlane.xlu0 %75 }
  0xc3   :  { %v78_v22 = vcvt.f32.s32 %v76_v21 }
  0xc5   :  { %v79_v24 = vshll.u32 %v78_v22, 16 }
  0xc6   :  { %v74_v23 = vpop.xlane.xlu0 %73 }
  0xc7   :  { %v77_v25 = vcvt.f32.s32 %v74_v23 }
  0xc9   :  { %v80_v26 = vadd.s32 %v79_v24, %v77_v25 }
  0xcb   :  { %v81_v27 = vrot.slane %v80_v26, 4 }
  0xcd   :  { %v82_v28 = vadd.s32 %v81_v27, %v80_v26 }
  0xcf   :  { %v83_v29 = vrot.slane %v82_v28, 2 }
  0xd1   :  { %v84_v30 = vadd.s32 %v83_v29, %v82_v28 }
  0xd3   :  { %v85_v31 = vrot.slane %v84_v30, 1 }
  0xd5   :  { %v86_v32 = vadd.s32 %v85_v31, %v84_v30 }
  0xd7   :  { %146 = vpush %v86_v32 }
 0x108   :  { %s147_s16 = spop %146 }
 0x109   :  { %v88_v33 = vstv %s147_s16 }
 0x10a   :  { %90 = vst.msk [vmem:[#allocation10] sm:$0x1] %vm89_vm13, %v88_v33 }
 0x10b   :  { %241 = shalt.err (!%p238_p3)
}
 0x10c   :  { %s242_s19 = scalar_lea.hbm %s356_s4, 16 }
 0x10d   :  { %p243_p4 = scmp.ne.s32.totalorder %s356_s4, %s242_s19  ;;  %p246_p5 = scmp.lt.u32.totalorder %s242_s19, %s356_s4 }
 0x10f   :  { %p248_p6 = pnand %p246_p5, %p243_p4 }
 0x111   :  { %251 = shalt.err (!%p248_p6)
}
 0x112   :  { %129 = dma.vmem_to_hbm [thread:$0]  %s127_s15, 16, %s356_s4, [#allocation9]  }
 0x113   :  { %256 = dma.done.wait [#allocation4], 64  }
 0x114   :  { %257 = vsyncadd [#allocation4], 4294967232 }
 0x115   :  { %258 = dma.done.wait [#allocation9], 32  }
 0x116   :  { %259 = vsyncadd [#allocation9], 4294967264 }
 0x117   :  { %139 = vsyncpa [#allocation3], 1 }
 0x118   :  { %140 = vsyncpa [#allocation4], 1 }
 0x119   :  { %141 = vsyncpa [#allocation9], 1 }
 0x11a   :  { %142 = vsyncpa [#allocation5], 1 }

</bundles_post_ra>
